<compile_context>
chip_gen: v7x
topology: tpu7x:2x2x1
jax: 0.10.0
libtpu: 0.0.40
codegen_flags: <defaults>
</compile_context>

<pallas_src>
import jax
import jax.numpy as jnp
from jax.experimental import pallas as pl
from jax.experimental.pallas import tpu as pltpu


_REPS = 4                      # number of chained MaxPool2d(k=1, s=2) layers
_STRIDE = 2 ** _REPS           # composed subsampling stride (16)

# Per in-flight input block, measured in *padded* VMEM bytes.  Double-buffered
# (2 x 8 MiB) plus the tiny output buffers stays well under the 32 MiB scoped
# limit we request below (safe on v5e / v6e / v7x).
_VMEM_BLOCK_BUDGET = 8 * 1024 * 1024
_VMEM_LIMIT_BYTES = 32 * 1024 * 1024


def _contour_kernel(x_ref, o_ref):
    # x_ref: (tbc, tho, 1, Wo, S).  The BlockSpec already dropped every H-row
    # the chained pools never read; keep only column 0 of each S-wide group,
    # i.e. the stride-S subsample along W.  Max over one element == identity.
    x = x_ref[...]
    o_ref[...] = x[:, :, 0, :, 0].astype(o_ref.dtype)


def _round_up(a, b):
    return (a + b - 1) // b * b


def _padded_row_bytes(wo, dtype):
    """Padded VMEM bytes of one (Wo, STRIDE) slab: Wo pads to the sublane
    multiple for this dtype, the 16-wide minor dim pads to 128 lanes."""
    itemsize = jnp.dtype(dtype).itemsize
    pack = max(1, 4 // itemsize)           # sub-32-bit dtypes pack along sublanes
    return _round_up(wo, 8 * pack) * 128 * itemsize


def _choose_tiles(bc, ho, row_bytes):
    """Pick (planes per step, Ho-rows per step) under the padded-VMEM budget."""
    plane_bytes = ho * row_bytes
    if plane_bytes <= _VMEM_BLOCK_BUDGET:
        tho = ho
        tbc = max(1, min(bc, _VMEM_BLOCK_BUDGET // plane_bytes))
        if bc > 1:                          # keep >=2 grid steps for megacore
            tbc = max(1, min(tbc, bc // 2))
        while bc % tbc:                     # full blocks only along the BC axis
            tbc -= 1
        return tbc, tho
    # Huge plane: one plane per step, tile Ho.  Keep tho a multiple of 8 so the
    # output block's sublane dim is layout-legal; Pallas masks the remainder.
    tbc = 1
    cap = max(1, _VMEM_BLOCK_BUDGET // row_bytes)
    tho = ho if ho <= 8 else min(ho, max(8, (cap // 8) * 8))
    return tbc, tho


def contour_detector(x):
    B, C, H, W = x.shape
    s = _STRIDE
    Ho = (H - 1) // s + 1      # == PyTorch output size after 4 chained pools
    Wo = (W - 1) // s + 1
    Hp, Wp = Ho * s, Wo * s
    if (Hp, Wp) != (H, W):
        # Rare path (spatial dims not multiples of 16).  Padded rows/cols are
        # never selected, so results are unaffected.
        x = jnp.pad(x, ((0, 0), (0, 0), (0, Hp - H), (0, Wp - W)))

    BC = B * C
    # Free, row-major-compatible view: element (bc, ho, hs, wo, ws) is the
    # original pixel (b, c, ho*s + hs, wo*s + ws).
    xv = x.reshape(BC, Ho, s, Wo, s)

    row_bytes = _padded_row_bytes(Wo, x.dtype)
    tbc, tho = _choose_tiles(BC, Ho, row_bytes)
    grid = (BC // tbc, pl.cdiv(Ho, tho))

    out = pl.pallas_call(
        _contour_kernel,
        out_shape=jax.ShapeDtypeStruct((BC, Ho, Wo), x.dtype),
        grid_spec=pltpu.PrefetchScalarGridSpec(
            num_scalar_prefetch=0,
            grid=grid,
            in_specs=[
                # Only sub-row 0 of every s-row group is DMA'd: 1/s of the
                # input rows.  Last two block dims equal the full array dims.
                pl.BlockSpec((tbc, tho, 1, Wo, s),
                             lambda i, j: (i, j, 0, 0, 0)),
            ],
            out_specs=pl.BlockSpec((tbc, tho, Wo), lambda i, j: (i, j, 0)),
        ),
        compiler_params=pltpu.CompilerParams(
            dimension_semantics=("parallel", "parallel"),
            vmem_limit_bytes=_VMEM_LIMIT_BYTES),
    )(xv)

    z = out.reshape(B, C, Ho, Wo)      # pooled activations (NCHW)
    y = out.reshape(B, C * Ho * Wo)    # nn.Flatten
    return z, y


if __name__ == "__main__":
    key = jax.random.PRNGKey(0)
    x = jax.random.normal(key, (2, 4, 16, 16), dtype=jnp.float32)

    z, y = contour_detector(x)
    jax.block_until_ready((z, y))

    # Reference: four chained k=1/s=2 pools == strided subsample by 16.
    z_ref = x[:, :, ::_STRIDE, ::_STRIDE]
    y_ref = z_ref.reshape(x.shape[0], -1)
    assert z.shape == (2, 4, 1, 1) and y.shape == (2, 4)
    assert jnp.array_equal(z, z_ref) and jnp.array_equal(y, y_ref)

    print("KERNEL_OK")
</pallas_src>

<mosaic_0001>
module attributes {stable_mosaic.version = 11 : i64} {
  func.func @_contour_kernel(%arg0: i32, %arg1: i32, %arg2: memref<4x1x1x1x16xf32, #tpu.memory_space<vmem>>, %arg3: memref<4x1x1xf32, #tpu.memory_space<vmem>>) attributes {dimension_semantics = [#tpu.dimension_semantics<parallel>, #tpu.dimension_semantics<parallel>], iteration_bounds = array<i64: 2, 1>, scalar_prefetch = 0 : i64, scratch_operands = 0 : i64, tpu.core_type = #tpu.core_type<tc>, window_params = [{transform_indices = @transform_0, window_bounds = array<i64: 4, 1, 1, 1, 16>}, {transform_indices = @transform_1, window_bounds = array<i64: 4, 1, 1>}]} {
    %c0 = arith.constant 0 : index
    %c0_0 = arith.constant 0 : index
    %c0_1 = arith.constant 0 : index
    %c0_2 = arith.constant 0 : index
    %c0_3 = arith.constant 0 : index
    %0 = vector.load %arg2[%c0, %c0_0, %c0_1, %c0_2, %c0_3] : memref<4x1x1x1x16xf32, #tpu.memory_space<vmem>>, vector<4x1x1x1x16xf32>
    %1 = vector.extract_strided_slice %0 {offsets = [0, 0, 0, 0, 0], sizes = [4, 1, 1, 1, 1], strides = [1, 1, 1, 1, 1]} : vector<4x1x1x1x16xf32> to vector<4x1x1x1x1xf32>
    %2 = vector.shape_cast %1 : vector<4x1x1x1x1xf32> to vector<4x1x1xf32>
    %c0_4 = arith.constant 0 : index
    %c0_5 = arith.constant 0 : index
    %c0_6 = arith.constant 0 : index
    %3 = vector.load %arg3[%c0_4, %c0_5, %c0_6] : memref<4x1x1xf32, #tpu.memory_space<vmem>>, vector<4x1x1xf32>
    tpu.vector_store %arg3[%c0_4, %c0_5, %c0_6], %2 {strides = array<i32>} : memref<4x1x1xf32, #tpu.memory_space<vmem>>, vector<4x1x1xf32>,
    return
  }
  func.func @transform_0(%arg0: i32, %arg1: i32) -> (i32, i32, i32, i32, i32) {
    %c0_i32 = arith.constant 0 : i32
    %c0_i32_0 = arith.constant 0 : i32
    %c0_i32_1 = arith.constant 0 : i32
    %c0_i32_2 = arith.constant 0 : i32
    return %arg0, %arg1, %c0_i32, %c0_i32_0, %c0_i32_1 : i32, i32, i32, i32, i32
  }
  func.func @transform_1(%arg0: i32, %arg1: i32) -> (i32, i32, i32) {
    %c0_i32 = arith.constant 0 : i32
    %c0_i32_0 = arith.constant 0 : i32
    return %arg0, %arg1, %c0_i32 : i32, i32, i32
  }
}

</mosaic_0001>

<bundles_post_ra>
// kernel: tpu_custom_call.1
= control target key start
LH: loop header
LB: loop body
LE: loop exit
PB: predicated region body
PF: predicated region fallthrough
CT: control target
= control target key end

     0   :  { %6 = vsyncpa [#allocation3], 0  ;;  %s548_s0 = inlined_call_operand.hbm [shape: f32[8,1,16,1,16], index: 0, kind: input, shape index: {}]   ;;  %s549_s1 = inlined_call_operand.vmem [shape: f32[8,1,1], index: 1, kind: output, shape index: {}]  }
   0x1   :  { %8 = vsyncpa [#allocation3 + $0x1], 0  ;;  %s423_s6 = smov 0   ;;  %s425_s7 = smov 0  }
   0x2   :  { %s427_s8 = smov 0   ;;  %s429_s9 = smov 0  }
   0x3   :  { %s431_s10 = smov 0   ;;  %s433_s11 = smov 0  }
   0x4 LB: > { %s254_s12 = sadd.s32 4294967295, %s407_s11   ;;  %s26_s13 = sadd.s32 1, %s403_s10  ;;  %s407_s11 = sphi %s433_s11, %s14_s11   ;;  %s403_s10 = sphi %s431_s10, %s558_s10   ;;  %s399_s9 = sphi %s429_s9, %s557_s9   ;;  %s395_s8 = sphi %s427_s8, %s556_s8   ;;  %s391_s7 = sphi %s425_s7, %s555_s7   ;;  %s387_s6 = sphi %s423_s6, %s554_s6  }
   0x5   : > { %p28_p0 = scmp.ge.s32.totalorder %s26_s13, 2  ;;  %s35_s14 = sadd.s32 1, %s395_s8 }
   0x6   : > { %p42_p1 = scmp.ne.s32.totalorder %s395_s8, %s391_s7  ;;  %p43_p2 = scmp.eq.s32.totalorder %s407_s11, 0 }
   0x7   : > { %s560_s13 = smov (%p28_p0, %s26_s13), 0  ;;  %p48_p4 = scmp.ne.s32.totalorder %s391_s7, %s387_s6 }
   0x8   : > { %p459_p3 = por %p43_p2, %p42_p1  ;;  %s30_s16 = ssub.s32 %s403_s10, %s560_s13 }
   0x9   : > { %p49_p5 = scmp.eq.s32.totalorder %s254_s12, 0  ;;  %p33_p6 = scmp.eq.s32.totalorder %s30_s16, 0 }
   0xa   : > { %p275_p8 = scmp.lt.s32.totalorder %s407_s11, 2  ;;  %s100_s19 = sand.u32 1, %s395_s8  }
   0xb   : > { %p466_p7 = por %p49_p5, %p48_p4  ;;  %s268_s20 = sshll.u32 %s403_s10, 10 }
   0xc   : > { %s472_s18 = scalar_select %p33_p6, %s395_s8, %s35_s14  }
   0xd   : > { %s258_s21 = sshll.u32 %s100_s19, 2  ;;  %s479_s24 = scalar_lea.hbm %s548_s0, %s268_s20 }
   0xe   : > { %s104_s25 = scalar_lea.vmem [#allocation2], %s258_s21  ;;  %p483_p9 = pnand %p275_p8, %p459_p3 }
   0xf   : > { %s114_s26 = sshll.u32 %s104_s25, 4  ;;  %s490_s28 = scalar_lea.sflag [#allocation3], %s100_s19  ;;  %s487_s26 = int_to_ptr.vmem [resolvable:$true] %s114_s26 }
  0x10   : > { %s327_s29 = scalar_lea.hbm %s479_s24, 64  ;;  %p329_p12 = pneg %p483_p9 }
  0x11   : > { %p328_p11 = scmp.ne.s32.totalorder %s479_s24, %s327_s29  ;;  %s332_s3 = scalar_lea.hbm %s548_s0, 2048 }
  0x12   : > { %p333_p1 = scmp.lt.u32.totalorder %s479_s24, %s548_s0  ;;  %p334_p2 = scmp.lt.u32.totalorder %s332_s3, %s327_s29 }
  0x13   : > { %p330_p13 = pnand %p329_p12, %p328_p11  ;;  %p336_p4 = scmp.lt.u32.totalorder %s327_s29, %s479_s24 }
  0x14   : > { %p335_p3 = por %p334_p2, %p333_p1 }
  0x15   : > { %p331_p0 = pneg %p330_p13 }
  0x16   : > { %p337_p5 = por %p336_p4, %p335_p3 }
  0x18   : > { %p338_p6 = pnand %p337_p5, %p331_p0 }
  0x1a   : > { %341 = shalt.err (!%p338_p6)
}
  0x1b   : > { %s342_s6 = scalar_lea.vmem %s487_s26, 64  ;;  %s409_s12 = smov [#allocation2]  }
  0x1c   : > { %p343_p8 = scmp.ne.s32.totalorder %s487_s26, %s342_s6  ;;  %s347_s14 = sshll.u32 %s409_s12, 4  ;;  %s348_s14 = int_to_ptr.vmem [resolvable:$false] %s347_s14 }
  0x1d   : > { %s349_s15 = scalar_lea.vmem %s348_s14, 128  ;;  %p350_p10 = scmp.lt.s32.totalorder %s487_s26, %s348_s14 }
  0x1e   : > { %p345_p11 = pnand %p343_p8, %p329_p12  ;;  %p351_p1 = scmp.lt.s32.totalorder %s349_s15, %s342_s6 }
  0x20   : > { %p346_p13 = pneg %p345_p11  ;;  %p352_p2 = por %p351_p1, %p350_p10 }
  0x22   : > { %p353_p3 = pnand %p352_p2, %p346_p13 }
  0x24   : > { %356 = shalt.err (!%p353_p3)
}
  0x25   : > { %s410_s16 = smov 256   ;;  %s411_s19 = smov 16  }
  0x26   : > { %s412_s20 = smov 1   ;;  %p122_p12 = scmp.lt.s32.totalorder %s407_s11, 3 }
  0x27   : > { %274 = dma.hbm_to_vmem [thread:$0]  (!%p483_p9), %s479_s24, 64, %s487_s26, %s490_s28, %s410_s16, %s411_s19, %s412_s20  }
  0x28   : > { %p553_p0 = scmp.ge.s32.totalorder %s407_s11, 1 }
  0x2a   : > { %p123_p4 = pnand %p553_p0, %p122_p12 }
  0x2b   : > { %s128_s21 = sand.u32 (!%p123_p4), 1, %s391_s7  }
  0x2c   : > { %126 = sbr.rel (%p123_p4) target bundleno = 59 (0x3b), region = 24  ;;  %s263_s22 = sshll.u32 (!%p123_p4), %s128_s21, 2 }
  0x2d   : > { %s129_s23 = scalar_lea.sflag (!%p123_p4), [#allocation3], %s128_s21  ;;  %s132_s25 = scalar_lea.vmem (!%p123_p4), [#allocation2], %s263_s22 }
  0x33   : > { %382 = dma.done.wait (%p466_p7), %s129_s23, 64  }
  0x34   : > { %384 = vsyncadd (%p466_p7), %s129_s23, 4294967232  ;;  %s264_s29 = sshll.u32 %s399_s9, 2  ;;  %vm166_vm0 = vcmask 0   ;;  %v162_v0 = vld [vmem:[%s132_s25] sm:$0x1] }
  0x35   : > { %p155_p10 = scmp.lt.s32.totalorder %s264_s29, 7  ;;  %v163_v1 = vld [vmem:[%s132_s25 + $0x1] sm:$0x1]  ;;  %v164_v2 = vld [vmem:[%s132_s25 + $0x2] sm:$0x1] }
  0x36   : > { %v165_v3 = vld [vmem:[%s132_s25 + $0x3] sm:$0x1] }
  0x37   : > { %s562_s29 = smov (!%p155_p10, %s264_s29), 7 }
  0x38   : > { %s160_s27 = scalar_lea.vmem %s549_s1, %s562_s29 }
  0x39   : > { %167 = vst.msk [vmem:[%s160_s27] sm:$0x1] %vm166_vm0, %v162_v0  ;;  %168 = vst.msk [vmem:[%s160_s27 + $0x1] sm:$0x1] %vm166_vm0, %v163_v1 }
  0x3a   : > { %169 = vst.msk [vmem:[%s160_s27 + $0x2] sm:$0x1] %vm166_vm0, %v164_v2  ;;  %170 = vst.msk [vmem:[%s160_s27 + $0x3] sm:$0x1] %vm166_vm0, %v165_v3 }
  0x3b PF: > { %s14_s11 = sadd.s32 1, %s407_s11   ;;  %s554_s6 = smov %s391_s7 }
  0x3c   : > { %p11_p7 = scmp.ge.s32.totalorder %s14_s11, 4   ;;  %s555_s7 = smov %s395_s8 }
  0x3d   : > { %s556_s8 = smov %s472_s18  ;;  %s557_s9 = smov %s403_s10 }
  0x3e   : > { %s558_s10 = smov %s560_s13  ;;  %13 = sbr.rel (!%p11_p7) target bundleno = 4 (0x4), region = 64 }
  0x45   :  { %197 = vsyncpa [#allocation3], 1 }
  0x46   :  { %199 = vsyncpa [#allocation3 + $0x1], 1 }

</bundles_post_ra>
